<compile_context>
chip_gen: v6e
topology: v6e:2x2x1
jax: 0.10.0
libtpu: 0.0.40
codegen_flags: <defaults>
</compile_context>

<pallas_src>
import jax
import jax.numpy as jnp
from jax.experimental import pallas as pl
from jax.experimental.pallas import tpu as pltpu


def _dynamic_conv_kernel(x_ref, w_ref, b_ref, o_ref):
    # Per grid step (one group of TP patches):
    #   x_ref: (B, TP*K)      bf16 lane-dense patch pixels (patch-major, then c,u,v)
    #   w_ref: (TP*K, TP*OC)  bf16 block-diagonal per-group weight matrix
    #   b_ref: (1, TP*OC)     f32 per-group biases (patch-major, then OC)
    #   o_ref: (B, TP*OC)     f32 lane-dense output slab
    acc = jnp.dot(x_ref[...], w_ref[...], preferred_element_type=jnp.float32)
    o_ref[...] = acc + b_ref[...]   # single hoisted bias add, single unmasked store


def _default_patches_per_group(P, OC):
    """Pick TP so N = TP*OC matches the MXU width.

    Target 256 lanes (v6e/v7x 2x256 MXU; also a multiple of the v5e 128-wide
    MXU and of the vreg lane count) while keeping >= 2 grid steps on large
    problems so BlockSpec double-buffering hides the weight DMA and the
    parallel grid axis shards across the 2 TCs on v7x.  Tiny problems: fuse
    everything into one step.
    """
    if P * OC <= 512:
        return P
    best = P
    for tp in range(P, 0, -1):
        if P % tp:
            continue
        n = tp * OC
        if n <= 512 and n % 256 == 0:
            return tp
        if n <= 512 and n % 128 == 0 and best == P:
            best = tp
    return best


def pack_dynamic_conv_params(weights, biases, group_size=None):
    """One-time parameter packing (model-load time).

    weights: (P, OC, C, ps, ps) torch conv layout
    biases : (P, OC)

    Returns:
      w_bd    : (n_groups, TP*K, TP*OC) bf16 block-diagonal per-group weights
      b_packed: (n_groups, 1, TP*OC)    f32 per-group biases
    Note: the block-diagonal pack grows weight bytes by (TP*OC)/OC per group;
    keep groups MXU-width-sized (128/256 lanes), never pack all P at once for
    large P.  For weight-HBM-bound large-P cases, quantize the blocks to int8
    (v5e/v6e) or fp8-e4m3 (v7x, no int MXU path) with a per-patch scale.
    """
    P, OC = weights.shape[0], weights.shape[1]
    K = weights.shape[2] * weights.shape[3] * weights.shape[4]
    TP = _default_patches_per_group(P, OC) if group_size is None else group_size
    assert P % TP == 0
    n_groups = P // TP

    w_kd = weights.reshape(P, OC, K).transpose(0, 2, 1)   # (P, K, OC), (c,u,v) flatten
    w_grp = w_kd.reshape(n_groups, TP, K, OC)
    eye = jnp.eye(TP, dtype=w_grp.dtype)
    # w_bd[g, p*K + k, q*OC + o] = w[g, p, k, o] if p == q else 0
    w_bd = jnp.einsum("gpko,pq->gpkqo", w_grp, eye)
    w_bd = w_bd.reshape(n_groups, TP * K, TP * OC).astype(jnp.bfloat16)

    b_packed = biases.reshape(n_groups, 1, TP * OC).astype(jnp.float32)
    return w_bd, b_packed


def dynamic_conv(x, w_bd, b_packed, img_size, patch_size, out_channels):
    B, C, H, W = x.shape
    ps = patch_size
    G = img_size // ps
    P = G * G
    K = C * ps * ps
    OC = out_channels

    n_groups = w_bd.shape[0]
    assert P % n_groups == 0
    TP = P // n_groups
    assert w_bd.shape == (n_groups, TP * K, TP * OC), w_bd.shape
    assert b_packed.shape == (n_groups, 1, TP * OC), b_packed.shape
    # Lane-dense output blocks: TP*OC must be 128-aligned unless there is a
    # single group (block == full array).
    assert TP == P or (TP * OC) % 128 == 0

    # x: (B, C, H, W) -> (n_groups, B, TP*K) bf16 lane-dense slab.  Per-patch
    # flattening order is (c, u, v), matching the packed weights.
    # TODO(synk): for real image sizes, extract patches in-kernel from the raw
    # NCHW input (BlockSpec over patch rows with W on the lane axis) to avoid
    # this wrapper-side extra HBM read+write pass over x.
    x_slab = (
        x.astype(jnp.bfloat16)
        .reshape(B, C, G, ps, G, ps)
        .transpose(2, 4, 0, 1, 3, 5)       # (G, G, B, C, ps, ps)
        .reshape(n_groups, TP, B, K)
        .transpose(0, 2, 1, 3)             # (n_groups, B, TP, K)
        .reshape(n_groups, B, TP * K)
    )

    out2d = pl.pallas_call(
        _dynamic_conv_kernel,
        out_shape=jax.ShapeDtypeStruct((B, P * OC), jnp.float32),
        grid_spec=pltpu.PrefetchScalarGridSpec(
            num_scalar_prefetch=0,
            grid=(n_groups,),
            in_specs=[
                pl.BlockSpec((None, B, TP * K), lambda g: (g, 0, 0)),
                pl.BlockSpec((None, TP * K, TP * OC), lambda g: (g, 0, 0)),
                pl.BlockSpec((None, 1, TP * OC), lambda g: (g, 0, 0)),
            ],
            out_specs=pl.BlockSpec((B, TP * OC), lambda g: (0, g)),
        ),
        compiler_params=pltpu.CompilerParams(
            # Patch-group axis is independent -> shards across the 2 TCs on
            # v7x once grid > 1; no-op at grid=(1,) and on v5e/v6e.
            dimension_semantics=("parallel",),
        ),
    )(x_slab, w_bd, b_packed)

    # (B, P*OC) -> (B, P, OC) -> (B, OC, P) -> (B, OC, G, G); matches
    # torch.cat(dim=2).reshape ordering (row-major p = i*G + j).  Tiny tensor.
    return out2d.reshape(B, P, OC).transpose(0, 2, 1).reshape(B, OC, G, G)


def reference_dynamic_conv(x, weights, biases, img_size, patch_size, out_channels):
    # Pure-JAX reference mirroring the PyTorch loop exactly (f32).
    B, C, H, W = x.shape
    ps = patch_size
    G = img_size // ps
    outs = []
    p = 0
    for i in range(G):
        for j in range(G):
            patch = x[:, :, ps * i:ps * (i + 1), ps * j:ps * (j + 1)]  # (B,C,ps,ps)
            w = weights[p]  # (OC, C, ps, ps)
            o = jnp.einsum("bcuv,ocuv->bo", patch, w) + biases[p]
            outs.append(o)
            p += 1
    out = jnp.stack(outs, axis=-1)  # (B, OC, P)
    return out.reshape(B, out_channels, G, G)


if __name__ == "__main__":
    # Small shapes consistent with the module.
    batch = 2
    in_channels = 4
    out_channels = 8
    img_size = 16
    patch_size = 4
    G = img_size // patch_size
    P = G * G
    ps = patch_size

    key = jax.random.PRNGKey(0)
    kx, kw, kb = jax.random.split(key, 3)

    x = jax.random.normal(kx, (batch, in_channels, img_size, img_size), jnp.float32)
    # weight_list: P convs, each (OC, C_in, ps, ps); bias_list: P biases (OC,)
    weights = 0.1 * jax.random.normal(
        kw, (P, out_channels, in_channels, ps, ps), jnp.float32)
    biases = 0.1 * jax.random.normal(kb, (P, out_channels), jnp.float32)

    # One-time parameter packing (model-load time).
    w_bd, b_packed = pack_dynamic_conv_params(weights, biases)

    out = dynamic_conv(x, w_bd, b_packed, img_size, patch_size, out_channels)
    out = jax.block_until_ready(out)

    ref = reference_dynamic_conv(x, weights, biases, img_size, patch_size, out_channels)
    ref = jax.block_until_ready(ref)

    assert out.shape == (batch, out_channels, G, G), out.shape
    max_err = float(jnp.max(jnp.abs(out - ref)))
    # bf16 input/weight streams (f32 accumulation) -> looser tolerance than f32.
    assert jnp.allclose(out, ref, atol=2e-2, rtol=2e-2), max_err

    print("KERNEL_OK")
</pallas_src>

<mosaic_0001>
module attributes {stable_mosaic.version = 11 : i64} {
  func.func @_dynamic_conv_kernel(%arg0: i32, %arg1: memref<1x2x1024xbf16, #tpu.memory_space<vmem>>, %arg2: memref<1x1024x128xbf16, #tpu.memory_space<vmem>>, %arg3: memref<1x1x128xf32, #tpu.memory_space<vmem>>, %arg4: memref<2x128xf32, #tpu.memory_space<vmem>>) attributes {dimension_semantics = [#tpu.dimension_semantics<parallel>], iteration_bounds = array<i64: 1>, scalar_prefetch = 0 : i64, scratch_operands = 0 : i64, tpu.core_type = #tpu.core_type<tc>, window_params = [{transform_indices = @transform_0, window_bounds = array<i64: 1, 2, 1024>}, {transform_indices = @transform_1, window_bounds = array<i64: 1, 1024, 128>}, {transform_indices = @transform_2, window_bounds = array<i64: 1, 1, 128>}, {transform_indices = @transform_3, window_bounds = array<i64: 2, 128>}]} {
    %c0 = arith.constant 0 : index
    %c0_0 = arith.constant 0 : index
    %c0_1 = arith.constant 0 : index
    %0 = vector.load %arg1[%c0, %c0_0, %c0_1] : memref<1x2x1024xbf16, #tpu.memory_space<vmem>>, vector<1x2x1024xbf16>
    %1 = vector.shape_cast %0 : vector<1x2x1024xbf16> to vector<2x1024xbf16>
    %c0_2 = arith.constant 0 : index
    %c0_3 = arith.constant 0 : index
    %c0_4 = arith.constant 0 : index
    %2 = vector.load %arg2[%c0_2, %c0_3, %c0_4] : memref<1x1024x128xbf16, #tpu.memory_space<vmem>>, vector<1x1024x128xbf16>
    %3 = vector.shape_cast %2 : vector<1x1024x128xbf16> to vector<1024x128xbf16>
    %cst = arith.constant dense<0.000000e+00> : vector<2x128xf32>
    %4 = tpu.matmul %1, %3, %cst {dimension_numbers = #tpu.dot_dimension_numbers<[1], [0], [0], [1], [0, 0, 1, 1], [], []>} : vector<2x1024xbf16>, vector<1024x128xbf16>, vector<2x128xf32> -> vector<2x128xf32>
    %c0_5 = arith.constant 0 : index
    %c0_6 = arith.constant 0 : index
    %c0_7 = arith.constant 0 : index
    %5 = vector.load %arg3[%c0_5, %c0_6, %c0_7] : memref<1x1x128xf32, #tpu.memory_space<vmem>>, vector<1x1x128xf32>
    %6 = vector.shape_cast %5 : vector<1x1x128xf32> to vector<1x128xf32>
    %7 = vector.broadcast %6 : vector<1x128xf32> to vector<2x128xf32>
    %8 = arith.addf %4, %7 : vector<2x128xf32>
    %c0_8 = arith.constant 0 : index
    %c0_9 = arith.constant 0 : index
    %9 = vector.load %arg4[%c0_8, %c0_9] : memref<2x128xf32, #tpu.memory_space<vmem>>, vector<2x128xf32>
    tpu.vector_store %arg4[%c0_8, %c0_9], %8 {strides = array<i32>} : memref<2x128xf32, #tpu.memory_space<vmem>>, vector<2x128xf32>,
    return
  }
  func.func @transform_0(%arg0: i32) -> (i32, i32, i32) {
    %c0_i32 = arith.constant 0 : i32
    %c0_i32_0 = arith.constant 0 : i32
    %c0_i32_1 = arith.constant 0 : i32
    return %arg0, %c0_i32, %c0_i32_0 : i32, i32, i32
  }
  func.func @transform_1(%arg0: i32) -> (i32, i32, i32) {
    %c0_i32 = arith.constant 0 : i32
    %c0_i32_0 = arith.constant 0 : i32
    %c0_i32_1 = arith.constant 0 : i32
    return %arg0, %c0_i32, %c0_i32_0 : i32, i32, i32
  }
  func.func @transform_2(%arg0: i32) -> (i32, i32, i32) {
    %c0_i32 = arith.constant 0 : i32
    %c0_i32_0 = arith.constant 0 : i32
    %c0_i32_1 = arith.constant 0 : i32
    return %arg0, %c0_i32, %c0_i32_0 : i32, i32, i32
  }
  func.func @transform_3(%arg0: i32) -> (i32, i32) {
    %c0_i32 = arith.constant 0 : i32
    %c0_i32_0 = arith.constant 0 : i32
    return %c0_i32, %arg0 : i32, i32
  }
}

</mosaic_0001>

<bundles_post_ra>
// kernel: tpu_custom_call.1
= control target key start
LH: loop header
LB: loop body
LE: loop exit
PB: predicated region body
PF: predicated region fallthrough
CT: control target
= control target key end

     0   :  { %8 = vsyncpa [#allocation3], 0  ;;  %s1138_s0 = inlined_call_operand.hbm [shape: bf16[1,2,1024], index: 0, kind: input, shape index: {}]   ;;  %s1139_s1 = inlined_call_operand.hbm [shape: bf16[1,1024,128], index: 1, kind: input, shape index: {}]   ;;  %s1140_s2 = inlined_call_operand.vmem [shape: f32[1,1,128], index: 2, kind: input, shape index: {}]   ;;  %s1141_s3 = inlined_call_operand.hbm [shape: f32[2,128], index: 3, kind: output, shape index: {}]  }
   0x1   :  { %9 = vsyncpa [#allocation6], 0 }
   0x2   :  { %10 = vsyncpa [#allocation4], 0  ;;  %s1087_s12 = smov [#allocation2]   ;;  %s1088_s14 = smov [#allocation5]  }
   0x3   :  { %s17_s13 = sshll.u32 %s1087_s12, 4  ;;  %s26_s15 = sshll.u32 %s1088_s14, 4  ;;  %s18_s13 = int_to_ptr.vmem [resolvable:$true] %s17_s13  ;;  %s27_s15 = int_to_ptr.vmem [resolvable:$true] %s26_s15 }
   0x4   :  { %s1029_s16 = scalar_lea.vmem %s18_s13, 128  ;;  %p1034_p1 = scmp.lt.s32.totalorder %s18_s13, %s18_s13 }
   0x5   :  { %p1030_p0 = scmp.ne.s32.totalorder %s18_s13, %s1029_s16  ;;  %p1035_p2 = scmp.lt.s32.totalorder %s1029_s16, %s1029_s16 }
   0x7   :  { %p1036_p3 = por %p1035_p2, %p1034_p1 }
   0x9   :  { %p1037_p4 = pnand %p1036_p3, %p1030_p0 }
   0xb   :  { %1040 = shalt.err (!%p1037_p4)
}
   0xc   :  { %20 = dma.hbm_to_vmem [thread:$0]  %s1138_s0, 128, %s18_s13, [#allocation3]  }
   0xd   :  { %s1049_s19 = scalar_lea.vmem %s27_s15, 8192  ;;  %p1054_p6 = scmp.lt.s32.totalorder %s27_s15, %s27_s15 }
   0xe   :  { %p1050_p5 = scmp.ne.s32.totalorder %s27_s15, %s1049_s19  ;;  %p1055_p7 = scmp.lt.s32.totalorder %s1049_s19, %s1049_s19 }
  0x10   :  { %p1056_p8 = por %p1055_p7, %p1054_p6 }
  0x12   :  { %p1057_p9 = pnand %p1056_p8, %p1050_p5 }
  0x14   :  { %1060 = shalt.err (!%p1057_p9)
}
  0x15   :  { %s1089_s20 = smov 64   ;;  %s1090_s21 = smov 4  }
  0x16   :  { %32 = dma.hbm_to_vmem [thread:$0]  %s1139_s1, 8192, %s27_s15, [#allocation6], %s1089_s20, %s1089_s20, %s1090_s21  }
  0x17   :  { %1081 = dma.done.wait [#allocation3], 128  }
  0x18   :  { %1082 = vsyncadd [#allocation3], 4294967168 }
  0x19   :  { %1083 = dma.done.wait [#allocation6], 8192  }
  0x1a   :  { %1084 = vsyncadd [#allocation6], 4294959104  ;;  %v956_v0 = vld [vmem:[#allocation5 + $0x78] sm:$0xff]   ;;  %v960_v4 = vld [vmem:[#allocation5 + $0x70] sm:$0xff]   ;;  %v1091_v22 = vmov 1966171168   ;;  %v183_v24 = vlaneseq }
  0x1b   :  { %v957_v1 = vld [vmem:[#allocation5 + $0xf8] sm:$0xff]   ;;  %862 = vmatprep.subr.bf16.mxu0 %v956_v0  ;;  %v961_v5 = vld [vmem:[#allocation5 + $0xf0] sm:$0xff]   ;;  %v964_v8 = vld [vmem:[#allocation5 + $0x68] sm:$0xff]   ;;  %v181_v23 = vunpack.c.l.s4 %v1091_v22  ;;  %s1092_s24 = smov [#allocation7]  }
  0x1c   :  { %v958_v2 = vld [vmem:[#allocation5 + $0x38] sm:$0xff]   ;;  %884 = vmatprep.subr.bf16.mxu1 %v957_v1  ;;  %v962_v6 = vld [vmem:[#allocation5 + $0x30] sm:$0xff]   ;;  %v965_v9 = vld [vmem:[#allocation5 + $0xe8] sm:$0xff]   ;;  %v184_v30 = vshrl.u32 %v183_v24, 7  ;;  %s787_s25 = sshll.u32 %s1092_s24, 4  ;;  %s788_s25 = int_to_ptr.vmem [resolvable:$true] %s787_s25 }
  0x1d   :  { %v959_v3 = vld [vmem:[#allocation5 + $0xb8] sm:$0xff]   ;;  %863 = vmatpush3.bf16.msra.mxu0 %v958_v2  ;;  %v963_v7 = vld [vmem:[#allocation5 + $0xb0] sm:$0xff]   ;;  %v966_v10 = vld [vmem:[#allocation5 + $0x28] sm:$0xff]   ;;  %v182_v29 = vunpack.c.0.s8 %v181_v23  ;;  %p1066_p11 = scmp.lt.s32.totalorder %s788_s25, %s788_s25 }
  0x1e   :  { %885 = vmatpush3.bf16.msra.mxu1 %v959_v3  ;;  %864 = vmatprep.subr.bf16.mxu0 %v960_v4  ;;  %v967_v11 = vld [vmem:[#allocation5 + $0xa8] sm:$0xff]   ;;  %v968_v12 = vld [vmem:[#allocation5 + $0x60] sm:$0xff]   ;;  %v972_v16 = vld [vmem:[#allocation5 + $0x58] sm:$0xff]  }
  0x1f   :  { %886 = vmatprep.subr.bf16.mxu1 %v961_v5  ;;  %v969_v13 = vld [vmem:[#allocation5 + $0xe0] sm:$0xff]   ;;  %v973_v17 = vld [vmem:[#allocation5 + $0xd8] sm:$0xff]   ;;  %v976_v20 = vld [vmem:[#allocation5 + $0x50] sm:$0xff]   ;;  %v1119_v35 = vsub.s32 %v182_v29, %v184_v30 }
  0x20   :  { %v970_v14 = vld [vmem:[#allocation5 + $0x20] sm:$0xff]   ;;  %v974_v18 = vld [vmem:[#allocation5 + $0x18] sm:$0xff]   ;;  %v977_v21 = vld [vmem:[#allocation5 + $0xd0] sm:$0xff]  }
  0x21   :  { %865 = vmatpush3.bf16.msra.mxu0 %v962_v6  ;;  %v971_v15 = vld [vmem:[#allocation5 + $0xa0] sm:$0xff]   ;;  %v975_v19 = vld [vmem:[#allocation5 + $0x98] sm:$0xff]   ;;  %v978_v25 = vld [vmem:[#allocation5 + $0x10] sm:$0xff]  }
  0x22   :  { %887 = vmatpush3.bf16.msra.mxu1 %v963_v7  ;;  %866 = vmatprep.subr.bf16.mxu0 %v964_v8  ;;  %v979_v26 = vld [vmem:[#allocation5 + $0x90] sm:$0xff]   ;;  %v980_v27 = vld [vmem:[#allocation5 + $0x48] sm:$0xff]   ;;  %v984_v33 = vld [vmem:[#allocation5 + $0x40] sm:$0xff]  }
  0x23   :  { %888 = vmatprep.subr.bf16.mxu1 %v965_v9  ;;  %v981_v28 = vld [vmem:[#allocation5 + $0xc8] sm:$0xff]   ;;  %v985_v34 = vld [vmem:[#allocation5 + $0xc0] sm:$0xff]   ;;  %v42_v38 = vld [vmem:[#allocation2] sm:$0xff] }
  0x24   :  { %v982_v31 = vld [vmem:[#allocation5 + $0x8] sm:$0xff]   ;;  %v986_v36 = vld [vmem:[#allocation5] sm:$0xff]   ;;  %v179_v39 = vcombine.high %v42_v38, %v42_v38  ;;  %v186_v40 = vrot.slane %v42_v38, %v1119_v35  ;;  %v989_v41 = vld [vmem:[#allocation5 + $0x178] sm:$0xff]  }
  0x25   :  { %867 = vmatpush3.bf16.msra.mxu0 %v966_v10  ;;  %v983_v32 = vld [vmem:[#allocation5 + $0x88] sm:$0xff]   ;;  %v987_v37 = vld [vmem:[#allocation5 + $0x80] sm:$0xff]   ;;  %v990_v42 = vld [vmem:[#allocation5 + $0x1f8] sm:$0xff]  }
  0x26   :  { %889 = vmatpush3.bf16.msra.mxu1 %v967_v11  ;;  %868 = vmatprep.subr.bf16.mxu0 %v968_v12  ;;  %v194_v43 = vcombine.high %v186_v40, %v186_v40  ;;  %v202_v44 = vrot.slane %v186_v40, %v1119_v35  ;;  %v1124_v45 = vrot.slane %v179_v39, %v1119_v35  ;;  %v991_v47 = vld [vmem:[#allocation5 + $0x138] sm:$0xff]   ;;  %v993_v50 = vld [vmem:[#allocation5 + $0x170] sm:$0xff]   ;;  %v997_v57 = vld [vmem:[#allocation5 + $0x168] sm:$0xff]  }
  0x27   :  { %890 = vmatprep.subr.bf16.mxu1 %v969_v13  ;;  %v992_v52 = vld [vmem:[#allocation5 + $0x1b8] sm:$0xff]   ;;  %v994_v54 = vld [vmem:[#allocation5 + $0x1f0] sm:$0xff]   ;;  %v998_v59 = vld [vmem:[#allocation5 + $0x1e8] sm:$0xff]  }
  0x28   :  { %v216_v46 = vrot.slane %v194_v43, %v1119_v35  ;;  %v195_v48 = vcombine.high %v1124_v45, %v1124_v45  ;;  %v224_v49 = vcombine.high %v202_v44, %v202_v44  ;;  %v995_v55 = vld [vmem:[#allocation5 + $0x130] sm:$0xff]   ;;  %v999_v60 = vld [vmem:[#allocation5 + $0x128] sm:$0xff]   ;;  %v1001_v61 = vld [vmem:[#allocation5 + $0x160] sm:$0xff]  }
  0x29   :  { %869 = vmatpush3.bf16.msra.mxu0 %v970_v14  ;;  %v996_v58 = vld [vmem:[#allocation5 + $0x1b0] sm:$0xff]   ;;  %v1000_v62 = vld [vmem:[#allocation5 + $0x1a8] sm:$0xff]   ;;  %v1002_v63 = vld [vmem:[#allocation5 + $0x1e0] sm:$0xff]  }
  0x2a   :  { %891 = vmatpush3.bf16.msra.mxu1 %v971_v15  ;;  %870 = vmatprep.subr.bf16.mxu0 %v972_v16  ;;  %v226_v51 = vcombine.high %v216_v46, %v216_v46  ;;  %v223_v53 = vrot.slane %v195_v48, %v1119_v35  ;;  %v1003_v0 = vld [vmem:[#allocation5 + $0x120] sm:$0xff]   ;;  %v1005_v1 = vld [vmem:[#allocation5 + $0x158] sm:$0xff]   ;;  %v1009_v5 = vld [vmem:[#allocation5 + $0x150] sm:$0xff]  }
  0x2b   :  { %892 = vmatprep.subr.bf16.mxu1 %v973_v17  ;;  %652 = vmatprep.mubr.bf16.mxu0 %v216_v46  ;;  %v1004_v2 = vld [vmem:[#allocation5 + $0x1a0] sm:$0xff]   ;;  %v1006_v3 = vld [vmem:[#allocation5 + $0x1d8] sm:$0xff]   ;;  %v1010_v7 = vld [vmem:[#allocation5 + $0x1d0] sm:$0xff]   ;;  %v209_v17 = vrot.slane %v1124_v45, %v1119_v35 }
  0x2c   :  { %692 = vmatprep.mubr.bf16.mxu1 %v226_v51  ;;  %v227_v56 = vcombine.high %v223_v53, %v223_v53  ;;  %v1007_v4 = vld [vmem:[#allocation5 + $0x118] sm:$0xff]   ;;  %v1011_v8 = vld [vmem:[#allocation5 + $0x110] sm:$0xff]   ;;  %v1013_v9 = vld [vmem:[#allocation5 + $0x148] sm:$0xff]  }
  0x2d   :  { %871 = vmatpush3.bf16.msra.mxu0 %v974_v18  ;;  %v1008_v6 = vld [vmem:[#allocation5 + $0x198] sm:$0xff]   ;;  %v1012_v10 = vld [vmem:[#allocation5 + $0x190] sm:$0xff]   ;;  %v1014_v11 = vld [vmem:[#allocation5 + $0x1c8] sm:$0xff]  }
  0x2e   :  { %893 = vmatpush3.bf16.msra.mxu1 %v975_v19  ;;  %872 = vmatprep.subr.bf16.mxu0 %v976_v20  ;;  %v1015_v12 = vld [vmem:[#allocation5 + $0x108] sm:$0xff]   ;;  %v1017_v13 = vld [vmem:[#allocation5 + $0x140] sm:$0xff]   ;;  %v225_v19 = vcombine.high %v209_v17, %v209_v17  ;;  %v797_v29 = vld [vmem:[%s1140_s2] ss:$0 sm:$0xff]  ;;  %s1061_s2 = scalar_lea.vmem %s788_s25, 32 }
  0x2f   :  { %894 = vmatprep.subr.bf16.mxu1 %v977_v21  ;;  %v1016_v14 = vld [vmem:[#allocation5 + $0x188] sm:$0xff]   ;;  %v1018_v15 = vld [vmem:[#allocation5 + $0x1c0] sm:$0xff]   ;;  %p1062_p10 = scmp.ne.s32.totalorder %s788_s25, %s1061_s2  ;;  %p1067_p12 = scmp.lt.s32.totalorder %s1061_s2, %s1061_s2 }
  0x30   :  { %v1019_v16 = vld [vmem:[#allocation5 + $0x100] sm:$0xff]  }
  0x31   :  { %873 = vmatpush3.bf16.msra.mxu0 %v978_v25  ;;  %v1020_v18 = vld [vmem:[#allocation5 + $0x180] sm:$0xff]   ;;  %p1068_p13 = por %p1067_p12, %p1066_p11 }
  0x32   :  { %895 = vmatpush3.bf16.msra.mxu1 %v979_v26  ;;  %874 = vmatprep.subr.bf16.mxu0 %v980_v27 }
  0x33   :  { %896 = vmatprep.subr.bf16.mxu1 %v981_v28  ;;  %p1069_p0 = pnand %p1068_p13, %p1062_p10 }
  0x35   :  { %875 = vmatpush3.bf16.msra.mxu0 %v982_v31 }
  0x36   :  { %897 = vmatpush3.bf16.msra.mxu1 %v983_v32  ;;  %876 = vmatprep.subr.bf16.mxu0 %v984_v33 }
  0x37   :  { %898 = vmatprep.subr.bf16.mxu1 %v985_v34 }
  0x39   :  { %877 = vmatpush3.bf16.msra.mxu0 %v986_v36 }
  0x3a   :  { %899 = vmatpush3.bf16.msra.mxu1 %v987_v37  ;;  %906 = vmatprep.subr.bf16.mxu0 %v989_v41 }
  0x3b   :  { %928 = vmatprep.subr.bf16.mxu1 %v990_v42 }
  0x3c   :  { %653 = vmatmul.mubr.bf16.vlgmr.msra.gmra.mxu0 %v202_v44 }
  0x3d   :  { %907 = vmatpush3.bf16.msra.mxu0 %v991_v47  ;;  %693 = vmatmul.mubr.bf16.vlgmr.msra.gmra.mxu1 %v224_v49 }
  0x3e   :  { %908 = vmatprep.subr.bf16.mxu0 %v993_v50  ;;  %929 = vmatpush3.bf16.msra.mxu1 %v992_v52 }
  0x3f   :  { %732 = vmatprep.mubr.bf16.mxu0 %v223_v53  ;;  %930 = vmatprep.subr.bf16.mxu1 %v994_v54 }
  0x40   :  { %772 = vmatprep.mubr.bf16.mxu1 %v227_v56 }
  0x41   :  { %909 = vmatpush3.bf16.msra.mxu0 %v995_v55 }
  0x42   :  { %910 = vmatprep.subr.bf16.mxu0 %v997_v57  ;;  %931 = vmatpush3.bf16.msra.mxu1 %v996_v58 }
  0x43   :  { %932 = vmatprep.subr.bf16.mxu1 %v998_v59 }
  0x45   :  { %911 = vmatpush3.bf16.msra.mxu0 %v999_v60 }
  0x46   :  { %912 = vmatprep.subr.bf16.mxu0 %v1001_v61  ;;  %933 = vmatpush3.bf16.msra.mxu1 %v1000_v62 }
  0x47   :  { %934 = vmatprep.subr.bf16.mxu1 %v1002_v63 }
  0x49   :  { %913 = vmatpush3.bf16.msra.mxu0 %v1003_v0 }
  0x4a   :  { %914 = vmatprep.subr.bf16.mxu0 %v1005_v1  ;;  %935 = vmatpush3.bf16.msra.mxu1 %v1004_v2 }
  0x4b   :  { %936 = vmatprep.subr.bf16.mxu1 %v1006_v3 }
  0x4d   :  { %915 = vmatpush3.bf16.msra.mxu0 %v1007_v4 }
  0x4e   :  { %916 = vmatprep.subr.bf16.mxu0 %v1009_v5  ;;  %937 = vmatpush3.bf16.msra.mxu1 %v1008_v6 }
  0x4f   :  { %938 = vmatprep.subr.bf16.mxu1 %v1010_v7 }
  0x51   :  { %917 = vmatpush3.bf16.msra.mxu0 %v1011_v8 }
  0x52   :  { %918 = vmatprep.subr.bf16.mxu0 %v1013_v9  ;;  %939 = vmatpush3.bf16.msra.mxu1 %v1012_v10 }
  0x53   :  { %940 = vmatprep.subr.bf16.mxu1 %v1014_v11 }
  0x55   :  { %919 = vmatpush3.bf16.msra.mxu0 %v1015_v12 }
  0x56   :  { %920 = vmatprep.subr.bf16.mxu0 %v1017_v13  ;;  %941 = vmatpush3.bf16.msra.mxu1 %v1016_v14 }
  0x57   :  { %942 = vmatprep.subr.bf16.mxu1 %v1018_v15 }
  0x59   :  { %921 = vmatpush3.bf16.msra.mxu0 %v1019_v16 }
  0x5a   :  { %943 = vmatpush3.bf16.msra.mxu1 %v1020_v18 }
  0x5c   :  { %733 = vmatmul.mubr.bf16.vlgmr.msra.gmra.mxu0 %v209_v17 }
  0x5d   :  { %773 = vmatmul.mubr.bf16.vlgmr.msra.gmra.mxu1 %v225_v19 }
  0xfc   :  { %v878_v20 = vpop.f32.mrf.mxu0 }
  0xfd   :  { %v900_v21 = vpop.f32.mrf.mxu1 }
  0xfe   :  { %v879_v22 = vpop.f32.mrf.mxu0 }
  0xff   :  { %v901_v23 = vpop.f32.mrf.mxu1  ;;  %v880_v28 = vadd.f32 %v879_v22, %v878_v20 }
 0x100   :  { %v881_v24 = vpop.f32.mrf.mxu0  ;;  %v902_v31 = vadd.f32 %v901_v23, %v900_v21 }
 0x101   :  { %v903_v25 = vpop.f32.mrf.mxu1  ;;  %v655_v30 = vadd.f32 %v880_v28, %v797_v29 }
 0x102   :  { %v882_v26 = vpop.f32.mrf.mxu0 }
 0x103   :  { %v904_v27 = vpop.f32.mrf.mxu1  ;;  %v695_v35 = vadd.f32 %v902_v31, %v655_v30 }
 0x11c   :  { %v922_v32 = vpop.f32.mrf.mxu0 }
 0x11d   :  { %v944_v33 = vpop.f32.mrf.mxu1 }
 0x11e   :  { %v923_v34 = vpop.f32.mrf.mxu0 }
 0x11f   :  { %v924_v36 = vadd.f32 %v923_v34, %v922_v32  ;;  %v945_v37 = vpop.f32.mrf.mxu1 }
 0x120   :  { %v925_v38 = vpop.f32.mrf.mxu0  ;;  %v946_v40 = vadd.f32 %v945_v37, %v944_v33 }
 0x121   :  { %v735_v39 = vadd.f32 %v924_v36, %v695_v35  ;;  %v947_v41 = vpop.f32.mrf.mxu1 }
 0x122   :  { %v926_v42 = vpop.f32.mrf.mxu0 }
 0x123   :  { %v775_v43 = vadd.f32 %v946_v40, %v735_v39  ;;  %v948_v44 = vpop.f32.mrf.mxu1 }
 0x125   :  { %780 = vst [vmem:[#allocation7] sm:$0x3] %v775_v43 }
 0x126   :  { %1072 = shalt.err (!%p1069_p0)
}
 0x127   :  { %790 = dma.vmem_to_hbm [thread:$0]  %s788_s25, 32, %s1141_s3, [#allocation4]  }
 0x128   :  { %1085 = dma.done.wait [#allocation4], 32  }
 0x129   :  { %1086 = vsyncadd [#allocation4], 4294967264 }
 0x12a   :  { %794 = vsyncpa [#allocation3], 1 }
 0x12b   :  { %795 = vsyncpa [#allocation6], 1 }
 0x12c   :  { %796 = vsyncpa [#allocation4], 1 }

</bundles_post_ra>
